<compile_context>
chip_gen: v5e
topology: v5e:2x2
jax: 0.10.0
libtpu: 0.0.40
codegen_flags: <defaults>
</compile_context>

<pallas_src>
import functools
import math

import jax
import jax.numpy as jnp
import numpy as np
from jax import lax
from jax.experimental import pallas as pl
from jax.experimental.pallas import tpu as pltpu


def _fused_attn_kernel(past, scale, x_ref, w_ref, b_ref, mask_ref,
                       kc_ref, vc_ref, o_ref, kco_ref, vco_ref,
                       keff_ref, veff_ref):
    E = x_ref.shape[-1]

    # ---- fused Q/K/V projection: one (T, E) @ (E, 3E) MXU matmul ----------
    x = x_ref[0]                                                    # (T, E)
    qkv = (jnp.dot(x, w_ref[...], preferred_element_type=jnp.float32)
           + b_ref[...])                                            # (T, 3E) f32
    q = qkv[:, :E] * scale                                          # pre-scaled queries
    k_new = qkv[:, E:2 * E]
    v_new = qkv[:, 2 * E:]

    # ---- in-place KV-cache window writeback (aliased HBM buffers) ---------
    kco_ref[0] = k_new.astype(kco_ref.dtype)
    vco_ref[0] = v_new.astype(vco_ref.dtype)

    # ---- assemble effective K/V [0:end_step) via sublane-offset stores ----
    # (no lane-offset concat / relayout; past is a static, 8-aligned row count)
    if past > 0:
        keff_ref[:past, :] = kc_ref[0, :past, :].astype(keff_ref.dtype)
        veff_ref[:past, :] = vc_ref[0, :past, :].astype(veff_ref.dtype)
    keff_ref[past:, :] = k_new
    veff_ref[past:, :] = v_new

    # ---- single score matmul: contract last dims directly (q @ K^T) -------
    dn = (((1,), (1,)), ((), ()))
    s = lax.dot_general(q, keff_ref[...], dn,
                        preferred_element_type=jnp.float32)         # (T, end_step)
    s = s + mask_ref[0]

    # ---- row softmax in f32 (exact divide, per correctness review) --------
    s_max = jnp.max(s, axis=-1, keepdims=True)
    p = jnp.exp(s - s_max)
    inv = 1.0 / jnp.sum(p, axis=-1, keepdims=True)                  # (T, 1)

    out = jnp.dot(p, veff_ref[...], preferred_element_type=jnp.float32) * inv
    o_ref[0] = out.astype(o_ref.dtype)


def simple_attention_with_kv_cache(x, attention_mask, k_cache, v_cache, params):
    """Returns (attn_out, new_k_cache, new_v_cache); caches updated in place."""
    B, T, E = x.shape
    Lc = k_cache.shape[1]
    end_step = attention_mask.shape[-1]
    past = end_step - T
    scale = 1.0 / math.sqrt(E)

    assert 0 <= past and end_step <= Lc
    assert T % 8 == 0 and end_step % 8 == 0, "seq / window must be 8-aligned (f32 sublane)"
    # TODO(synk): support past_kv_len not a multiple of T (pl.ds / pl.Element
    # window offsets) and pass `past` via scalar prefetch with a fixed max
    # window so serving doesn't recompile per decode step.
    assert past % T == 0, "cache write window must start on a T-aligned row"

    # Fused projection weights: one wide (E, 3E) matmul instead of 3 narrow ones.
    w_qkv = jnp.concatenate([params["wq"], params["wk"], params["wv"]], axis=1)
    b_qkv = jnp.concatenate([params["bq"], params["bk"], params["bv"]], axis=1)

    kernel = functools.partial(_fused_attn_kernel, past, scale)
    per_batch = lambda b: (b, 0, 0)
    shared = lambda b: (0, 0)
    cache_win = lambda b: (b, past // T, 0)

    out_shapes = (
        jax.ShapeDtypeStruct((B, T, E), x.dtype),
        jax.ShapeDtypeStruct(k_cache.shape, k_cache.dtype),
        jax.ShapeDtypeStruct(v_cache.shape, v_cache.dtype),
    )

    # TODO(synk): for long contexts, tile the [0:end_step) KV axis with a second
    # "arbitrary" grid axis + flash-style m/l/acc scratch (and bf16 caches) so
    # VMEM use is context-length independent (v7x has only 64 MiB per TC).
    return pl.pallas_call(
        kernel,
        out_shape=out_shapes,
        grid_spec=pltpu.PrefetchScalarGridSpec(
            num_scalar_prefetch=0,
            grid=(B,),
            in_specs=[
                pl.BlockSpec((1, T, E), per_batch),            # x rows of batch b
                pl.BlockSpec((E, 3 * E), shared),              # fused W_qkv
                pl.BlockSpec((1, 3 * E), shared),              # fused b_qkv
                pl.BlockSpec((1, T, end_step), per_batch),     # additive mask
                pl.BlockSpec((1, end_step, E), per_batch),     # k_cache[:, :end_step]
                pl.BlockSpec((1, end_step, E), per_batch),     # v_cache[:, :end_step]
            ],
            out_specs=[
                pl.BlockSpec((1, T, E), per_batch),            # attention output
                pl.BlockSpec((1, T, E), cache_win),            # k-cache window only
                pl.BlockSpec((1, T, E), cache_win),            # v-cache window only
            ],
            scratch_shapes=[
                pltpu.VMEM((end_step, E), jnp.float32),        # K_eff
                pltpu.VMEM((end_step, E), jnp.float32),        # V_eff
            ],
        ),
        # In-place cache update: k_cache (input 4) -> output 1, v_cache (5) -> 2.
        input_output_aliases={4: 1, 5: 2},
        compiler_params=pltpu.CompilerParams(
            dimension_semantics=("parallel",),
            vmem_limit_bytes=32 * 1024 * 1024),
    )(x, w_qkv, b_qkv, attention_mask, k_cache, v_cache)


def _reference(x, mask, k_cache, v_cache, params):
    """Plain-JAX reference mirroring the PyTorch forward."""
    q = x @ params["wq"] + params["bq"]
    k_new = x @ params["wk"] + params["bk"]
    v_new = x @ params["wv"] + params["bv"]
    T = x.shape[1]
    end_step = mask.shape[-1]
    past = end_step - T
    kc = k_cache.at[:, past:end_step, :].set(k_new)
    vc = v_cache.at[:, past:end_step, :].set(v_new)
    K = kc[:, :end_step, :]
    V = vc[:, :end_step, :]
    s = jnp.einsum("bqd,bkd->bqk", q, K) / math.sqrt(x.shape[-1]) + mask
    p = jax.nn.softmax(s, axis=-1)
    out = jnp.einsum("bqk,bkd->bqd", p, V)
    return out, kc, vc


if __name__ == "__main__":
    B, T, E = 2, 8, 128         # batch, new-query length, embed_size (lane-dense)
    Lc = 32                     # total cache capacity (> end_step to exercise
                                # the tightened [0:end_step) cache read)
    past_kv_len = 8
    end_step = past_kv_len + T  # = 16 = attention_mask.shape[-1]

    key = jax.random.PRNGKey(0)
    kx, kkc, kvc, kq, kk, kv, kbq, kbk, kbv = jax.random.split(key, 9)

    x = jax.random.normal(kx, (B, T, E), dtype=jnp.float32)
    k_cache = jax.random.normal(kkc, (B, Lc, E), dtype=jnp.float32)
    v_cache = jax.random.normal(kvc, (B, Lc, E), dtype=jnp.float32)

    # Deterministic parameter init (synthetic). Stored as (in, out) for x @ W.
    bound = 1.0 / math.sqrt(E)
    params = {
        "wq": jax.random.uniform(kq, (E, E), jnp.float32, -bound, bound),
        "wk": jax.random.uniform(kk, (E, E), jnp.float32, -bound, bound),
        "wv": jax.random.uniform(kv, (E, E), jnp.float32, -bound, bound),
        "bq": jax.random.uniform(kbq, (1, E), jnp.float32, -bound, bound),
        "bk": jax.random.uniform(kbk, (1, E), jnp.float32, -bound, bound),
        "bv": jax.random.uniform(kbv, (1, E), jnp.float32, -bound, bound),
    }

    # Additive causal mask over global positions: query i (global past+i) may
    # attend to cached/new positions j <= past + i.
    qpos = past_kv_len + jnp.arange(T)[:, None]          # (T, 1)
    kpos = jnp.arange(end_step)[None, :]                 # (1, end_step)
    mask2d = jnp.where(kpos <= qpos, 0.0, -1e9).astype(jnp.float32)
    attention_mask = jnp.broadcast_to(mask2d, (B, T, end_step))

    # Reference first (the kernel aliases the caches at the XLA level).
    ref_out, ref_kc, ref_vc = _reference(x, attention_mask, k_cache, v_cache, params)

    out, new_kc, new_vc = simple_attention_with_kv_cache(
        x, attention_mask, k_cache, v_cache, params)
    jax.block_until_ready((out, new_kc, new_vc))

    np.testing.assert_allclose(np.asarray(out), np.asarray(ref_out), rtol=5e-4, atol=5e-4)
    np.testing.assert_allclose(np.asarray(new_kc), np.asarray(ref_kc), rtol=2e-5, atol=2e-5)
    np.testing.assert_allclose(np.asarray(new_vc), np.asarray(ref_vc), rtol=2e-5, atol=2e-5)

    print("KERNEL_OK")
</pallas_src>

<mosaic_0001>
module attributes {stable_mosaic.version = 11 : i64} {
  func.func @_fused_attn_kernel(%arg0: i32, %arg1: memref<1x8x128xf32, #tpu.memory_space<vmem>>, %arg2: memref<128x384xf32, #tpu.memory_space<vmem>>, %arg3: memref<1x384xf32, #tpu.memory_space<vmem>>, %arg4: memref<1x8x16xf32, #tpu.memory_space<vmem>>, %arg5: memref<1x16x128xf32, #tpu.memory_space<vmem>>, %arg6: memref<1x16x128xf32, #tpu.memory_space<vmem>>, %arg7: memref<1x8x128xf32, #tpu.memory_space<vmem>>, %arg8: memref<1x8x128xf32, #tpu.memory_space<vmem>>, %arg9: memref<1x8x128xf32, #tpu.memory_space<vmem>>, %arg10: memref<16x128xf32, #tpu.memory_space<vmem>>, %arg11: memref<16x128xf32, #tpu.memory_space<vmem>>) attributes {dimension_semantics = [#tpu.dimension_semantics<parallel>], iteration_bounds = array<i64: 2>, scalar_prefetch = 0 : i64, scratch_operands = 2 : i64, tpu.core_type = #tpu.core_type<tc>, window_params = [{transform_indices = @transform_0, window_bounds = array<i64: 1, 8, 128>}, {pipeline_mode = #tpu.pipeline_mode<synchronous>, transform_indices = @transform_1, window_bounds = array<i64: 128, 384>}, {pipeline_mode = #tpu.pipeline_mode<synchronous>, transform_indices = @transform_2, window_bounds = array<i64: 1, 384>}, {transform_indices = @transform_3, window_bounds = array<i64: 1, 8, 16>}, {transform_indices = @transform_4, window_bounds = array<i64: 1, 16, 128>}, {transform_indices = @transform_5, window_bounds = array<i64: 1, 16, 128>}, {transform_indices = @transform_6, window_bounds = array<i64: 1, 8, 128>}, {transform_indices = @transform_7, window_bounds = array<i64: 1, 8, 128>}, {transform_indices = @transform_8, window_bounds = array<i64: 1, 8, 128>}]} {
    %c0 = arith.constant 0 : index
    %c0_0 = arith.constant 0 : index
    %c0_1 = arith.constant 0 : index
    %0 = vector.load %arg1[%c0, %c0_0, %c0_1] : memref<1x8x128xf32, #tpu.memory_space<vmem>>, vector<1x8x128xf32>
    %1 = vector.shape_cast %0 : vector<1x8x128xf32> to vector<8x128xf32>
    %c0_2 = arith.constant 0 : index
    %c0_3 = arith.constant 0 : index
    %2 = vector.load %arg2[%c0_2, %c0_3] : memref<128x384xf32, #tpu.memory_space<vmem>>, vector<128x384xf32>
    %cst = arith.constant dense<0.000000e+00> : vector<8x384xf32>
    %3 = tpu.matmul %1, %2, %cst {dimension_numbers = #tpu.dot_dimension_numbers<[1], [0], [0], [1], [0, 0, 1, 1], [], []>} : vector<8x128xf32>, vector<128x384xf32>, vector<8x384xf32> -> vector<8x384xf32>
    %c0_4 = arith.constant 0 : index
    %c0_5 = arith.constant 0 : index
    %4 = vector.load %arg3[%c0_4, %c0_5] : memref<1x384xf32, #tpu.memory_space<vmem>>, vector<1x384xf32>
    %5 = vector.broadcast %4 : vector<1x384xf32> to vector<8x384xf32>
    %6 = arith.addf %3, %5 : vector<8x384xf32>
    %7 = vector.extract_strided_slice %6 {offsets = [0, 0], sizes = [8, 128], strides = [1, 1]} : vector<8x384xf32> to vector<8x128xf32>
    %cst_6 = arith.constant 0.0883883461 : f32
    %8 = vector.broadcast %cst_6 : f32 to vector<8x128xf32>
    %9 = arith.mulf %7, %8 : vector<8x128xf32>
    %10 = vector.extract_strided_slice %6 {offsets = [0, 128], sizes = [8, 128], strides = [1, 1]} : vector<8x384xf32> to vector<8x128xf32>
    %11 = vector.extract_strided_slice %6 {offsets = [0, 256], sizes = [8, 128], strides = [1, 1]} : vector<8x384xf32> to vector<8x128xf32>
    %c0_7 = arith.constant 0 : index
    %c0_8 = arith.constant 0 : index
    %c0_9 = arith.constant 0 : index
    %12 = vector.load %arg8[%c0_7, %c0_8, %c0_9] : memref<1x8x128xf32, #tpu.memory_space<vmem>>, vector<1x8x128xf32>
    %13 = vector.shape_cast %12 : vector<1x8x128xf32> to vector<8x128xf32>
    %14 = vector.shape_cast %10 : vector<8x128xf32> to vector<1x8x128xf32>
    tpu.vector_store %arg8[%c0_7, %c0_8, %c0_9], %14 {strides = array<i32>} : memref<1x8x128xf32, #tpu.memory_space<vmem>>, vector<1x8x128xf32>,
    %c0_10 = arith.constant 0 : index
    %c0_11 = arith.constant 0 : index
    %c0_12 = arith.constant 0 : index
    %15 = vector.load %arg9[%c0_10, %c0_11, %c0_12] : memref<1x8x128xf32, #tpu.memory_space<vmem>>, vector<1x8x128xf32>
    %16 = vector.shape_cast %15 : vector<1x8x128xf32> to vector<8x128xf32>
    %17 = vector.shape_cast %11 : vector<8x128xf32> to vector<1x8x128xf32>
    tpu.vector_store %arg9[%c0_10, %c0_11, %c0_12], %17 {strides = array<i32>} : memref<1x8x128xf32, #tpu.memory_space<vmem>>, vector<1x8x128xf32>,
    %c0_13 = arith.constant 0 : index
    %c0_14 = arith.constant 0 : index
    %c0_15 = arith.constant 0 : index
    %18 = vector.load %arg5[%c0_13, %c0_14, %c0_15] : memref<1x16x128xf32, #tpu.memory_space<vmem>>, vector<1x8x128xf32>
    %19 = vector.shape_cast %18 : vector<1x8x128xf32> to vector<8x128xf32>
    %c0_16 = arith.constant 0 : index
    %c0_17 = arith.constant 0 : index
    %20 = vector.load %arg10[%c0_16, %c0_17] : memref<16x128xf32, #tpu.memory_space<vmem>>, vector<8x128xf32>
    tpu.vector_store %arg10[%c0_16, %c0_17], %19 {strides = array<i32>} : memref<16x128xf32, #tpu.memory_space<vmem>>, vector<8x128xf32>,
    %c0_18 = arith.constant 0 : index
    %c0_19 = arith.constant 0 : index
    %c0_20 = arith.constant 0 : index
    %21 = vector.load %arg6[%c0_18, %c0_19, %c0_20] : memref<1x16x128xf32, #tpu.memory_space<vmem>>, vector<1x8x128xf32>
    %22 = vector.shape_cast %21 : vector<1x8x128xf32> to vector<8x128xf32>
    %c0_21 = arith.constant 0 : index
    %c0_22 = arith.constant 0 : index
    %23 = vector.load %arg11[%c0_21, %c0_22] : memref<16x128xf32, #tpu.memory_space<vmem>>, vector<8x128xf32>
    tpu.vector_store %arg11[%c0_21, %c0_22], %22 {strides = array<i32>} : memref<16x128xf32, #tpu.memory_space<vmem>>, vector<8x128xf32>,
    %c8 = arith.constant 8 : index
    %c0_23 = arith.constant 0 : index
    %24 = vector.load %arg10[%c8, %c0_23] : memref<16x128xf32, #tpu.memory_space<vmem>>, vector<8x128xf32>
    tpu.vector_store %arg10[%c8, %c0_23], %10 {strides = array<i32>} : memref<16x128xf32, #tpu.memory_space<vmem>>, vector<8x128xf32>,
    %c8_24 = arith.constant 8 : index
    %c0_25 = arith.constant 0 : index
    %25 = vector.load %arg11[%c8_24, %c0_25] : memref<16x128xf32, #tpu.memory_space<vmem>>, vector<8x128xf32>
    tpu.vector_store %arg11[%c8_24, %c0_25], %11 {strides = array<i32>} : memref<16x128xf32, #tpu.memory_space<vmem>>, vector<8x128xf32>,
    %c0_26 = arith.constant 0 : index
    %c0_27 = arith.constant 0 : index
    %26 = vector.load %arg10[%c0_26, %c0_27] : memref<16x128xf32, #tpu.memory_space<vmem>>, vector<16x128xf32>
    %cst_28 = arith.constant dense<0.000000e+00> : vector<8x16xf32>
    %27 = tpu.matmul %9, %26, %cst_28 {dimension_numbers = #tpu.dot_dimension_numbers<[1], [1], [0], [0], [0, 0, 1, 0], [], []>} : vector<8x128xf32>, vector<16x128xf32>, vector<8x16xf32> -> vector<8x16xf32>
    %c0_29 = arith.constant 0 : index
    %c0_30 = arith.constant 0 : index
    %c0_31 = arith.constant 0 : index
    %28 = vector.load %arg4[%c0_29, %c0_30, %c0_31] : memref<1x8x16xf32, #tpu.memory_space<vmem>>, vector<1x8x16xf32>
    %29 = vector.shape_cast %28 : vector<1x8x16xf32> to vector<8x16xf32>
    %30 = arith.addf %27, %29 : vector<8x16xf32>
    %cst_32 = arith.constant dense<0xFF800000> : vector<8xf32>
    %31 = vector.multi_reduction <maximumf>, %30, %cst_32 [1] : vector<8x16xf32> to vector<8xf32>
    %32 = vector.shape_cast %31 : vector<8xf32> to vector<8x1xf32>
    %33 = vector.broadcast %32 : vector<8x1xf32> to vector<8x16xf32>
    %34 = arith.subf %30, %33 : vector<8x16xf32>
    %35 = math.exp %34 : vector<8x16xf32>
    %cst_33 = arith.constant dense<0.000000e+00> : vector<8xf32>
    %36 = vector.multi_reduction <add>, %35, %cst_33 [1] : vector<8x16xf32> to vector<8xf32>
    %37 = vector.shape_cast %36 : vector<8xf32> to vector<8x1xf32>
    %cst_34 = arith.constant 1.000000e+00 : f32
    %38 = vector.broadcast %cst_34 : f32 to vector<8x1xf32>
    %39 = arith.divf %38, %37 : vector<8x1xf32>
    %c0_35 = arith.constant 0 : index
    %c0_36 = arith.constant 0 : index
    %40 = vector.load %arg11[%c0_35, %c0_36] : memref<16x128xf32, #tpu.memory_space<vmem>>, vector<16x128xf32>
    %cst_37 = arith.constant dense<0.000000e+00> : vector<8x128xf32>
    %41 = tpu.matmul %35, %40, %cst_37 {dimension_numbers = #tpu.dot_dimension_numbers<[1], [0], [0], [1], [0, 0, 1, 1], [], []>} : vector<8x16xf32>, vector<16x128xf32>, vector<8x128xf32> -> vector<8x128xf32>
    %42 = vector.broadcast %39 : vector<8x1xf32> to vector<8x128xf32>
    %43 = arith.mulf %41, %42 : vector<8x128xf32>
    %c0_38 = arith.constant 0 : index
    %c0_39 = arith.constant 0 : index
    %c0_40 = arith.constant 0 : index
    %44 = vector.load %arg7[%c0_38, %c0_39, %c0_40] : memref<1x8x128xf32, #tpu.memory_space<vmem>>, vector<1x8x128xf32>
    %45 = vector.shape_cast %44 : vector<1x8x128xf32> to vector<8x128xf32>
    %46 = vector.shape_cast %43 : vector<8x128xf32> to vector<1x8x128xf32>
    tpu.vector_store %arg7[%c0_38, %c0_39, %c0_40], %46 {strides = array<i32>} : memref<1x8x128xf32, #tpu.memory_space<vmem>>, vector<1x8x128xf32>,
    return
  }
  func.func @transform_0(%arg0: i32) -> (i32, i32, i32) {
    %c0_i32 = arith.constant 0 : i32
    %c0_i32_0 = arith.constant 0 : i32
    %c0_i32_1 = arith.constant 0 : i32
    return %arg0, %c0_i32, %c0_i32_0 : i32, i32, i32
  }
  func.func @transform_1(%arg0: i32) -> (i32, i32) {
    %c0_i32 = arith.constant 0 : i32
    %c0_i32_0 = arith.constant 0 : i32
    %c0_i32_1 = arith.constant 0 : i32
    return %c0_i32, %c0_i32_0 : i32, i32
  }
  func.func @transform_2(%arg0: i32) -> (i32, i32) {
    %c0_i32 = arith.constant 0 : i32
    %c0_i32_0 = arith.constant 0 : i32
    %c0_i32_1 = arith.constant 0 : i32
    return %c0_i32, %c0_i32_0 : i32, i32
  }
  func.func @transform_3(%arg0: i32) -> (i32, i32, i32) {
    %c0_i32 = arith.constant 0 : i32
    %c0_i32_0 = arith.constant 0 : i32
    %c0_i32_1 = arith.constant 0 : i32
    return %arg0, %c0_i32, %c0_i32_0 : i32, i32, i32
  }
  func.func @transform_4(%arg0: i32) -> (i32, i32, i32) {
    %c0_i32 = arith.constant 0 : i32
    %c0_i32_0 = arith.constant 0 : i32
    %c0_i32_1 = arith.constant 0 : i32
    return %arg0, %c0_i32, %c0_i32_0 : i32, i32, i32
  }
  func.func @transform_5(%arg0: i32) -> (i32, i32, i32) {
    %c0_i32 = arith.constant 0 : i32
    %c0_i32_0 = arith.constant 0 : i32
    %c0_i32_1 = arith.constant 0 : i32
    return %arg0, %c0_i32, %c0_i32_0 : i32, i32, i32
  }
  func.func @transform_6(%arg0: i32) -> (i32, i32, i32) {
    %c0_i32 = arith.constant 0 : i32
    %c0_i32_0 = arith.constant 0 : i32
    %c0_i32_1 = arith.constant 0 : i32
    return %arg0, %c0_i32, %c0_i32_0 : i32, i32, i32
  }
  func.func @transform_7(%arg0: i32) -> (i32, i32, i32) {
    %c1_i32 = arith.constant 1 : i32
    %c0_i32 = arith.constant 0 : i32
    %c0_i32_0 = arith.constant 0 : i32
    return %arg0, %c1_i32, %c0_i32 : i32, i32, i32
  }
  func.func @transform_8(%arg0: i32) -> (i32, i32, i32) {
    %c1_i32 = arith.constant 1 : i32
    %c0_i32 = arith.constant 0 : i32
    %c0_i32_0 = arith.constant 0 : i32
    return %arg0, %c1_i32, %c0_i32 : i32, i32, i32
  }
}

</mosaic_0001>

<bundles_post_ra>
// kernel: tpu_custom_call.1
= control target key start
LH: loop header
LB: loop body
LE: loop exit
PB: predicated region body
PF: predicated region fallthrough
CT: control target
= control target key end

     0   :  { %s1541_s0 = inlined_call_operand.vmem [shape: f32[2,8,128], index: 0, kind: input, shape index: {}]   ;;  %s1542_s1 = inlined_call_operand.hbm [shape: f32[128,384], index: 1, kind: input, shape index: {}]   ;;  %s1543_s2 = inlined_call_operand.vmem [shape: f32[1,384], index: 2, kind: input, shape index: {}]   ;;  %s1544_s3 = inlined_call_operand.vmem [shape: f32[2,8,16], index: 3, kind: input, shape index: {}]   ;;  %s1545_s4 = inlined_call_operand.hbm [shape: f32[2,32,128], index: 4, kind: input, shape index: {}, may-alias: {4,7}]   ;;  %s1546_s5 = inlined_call_operand.hbm [shape: f32[2,32,128], index: 5, kind: input, shape index: {}, may-alias: {5,8}]   ;;  %s1547_s6 = inlined_call_operand.hbm [shape: f32[2,8,128], index: 6, kind: output, shape index: {0}]   ;;  %s1548_s7 = inlined_call_operand.hbm [shape: f32[2,32,128], index: 7, kind: output, shape index: {1}, may-alias: {4,7}]   ;;  %s1549_s8 = inlined_call_operand.hbm [shape: f32[2,32,128], index: 8, kind: output, shape index: {2}, may-alias: {5,8}]  }
   0x1   :  { %1560 = sst [smem:[#allocation23_spill]] %s1542_s1 }
   0x2   :  { %1561 = sst [smem:[#allocation24_spill]] %s1545_s4 }
   0x3   :  { %14 = vsyncpa [#allocation5], 0 }
   0x4   :  { %15 = vsyncpa [#allocation8], 0 }
   0x5   :  { %17 = vsyncpa [#allocation8 + $0x1], 0 }
   0x6   :  { %18 = vsyncpa [#allocation6], 0 }
   0x7   :  { %20 = vsyncpa [#allocation6 + $0x1], 0 }
   0x8   :  { %21 = vsyncpa [#allocation12], 0 }
   0x9   :  { %23 = vsyncpa [#allocation12 + $0x1], 0  ;;  %s1272_s27 = smov 0   ;;  %s1274_s28 = smov 0  }
   0xa   :  { %s1276_s29 = smov 0   ;;  %s1278_s30 = smov 0  }
   0xb LB: > { %1562 = sst [smem:[#allocation18_spill]] %s1216_s29  ;;  %s1293_s9 = sadd.s32 1, %s1220_s30   ;;  %s1220_s30 = sphi %s1278_s30, %s1583_s30   ;;  %s1216_s29 = sphi %s1276_s29, %s1585_s29   ;;  %s1212_s28 = sphi %s1274_s28, %s1587_s28   ;;  %s1208_s27 = sphi %s1272_s27, %s1586_s27  }
   0xc   : > { %1563 = sst [smem:[#allocation19_spill]] %s1220_s30  ;;  %s130_s10 = sadd.s32 1, %s1216_s29 }
   0xd   : > { %1564 = sst [smem:[#allocation20_spill]] %s1293_s9  ;;  %s127_s11 = ssub.s32 %s1220_s30, %s1293_s9 }
   0xe   : > { %p137_p0 = scmp.ne.s32.totalorder %s1216_s29, %s1212_s28  ;;  %p128_p1 = scmp.eq.s32.totalorder %s127_s11, 0 }
   0xf   : > { %p138_p2 = scmp.eq.s32.totalorder %s1220_s30, 0  ;;  %p956_p4 = scmp.lt.s32.totalorder %s1220_s30, 2 }
  0x10   : > { %s1304_s12 = scalar_select %p128_p1, %s1216_s29, %s130_s10  }
  0x11   : > { %p139_p5 = por %p138_p2, %p137_p0  ;;  %s302_s13 = sand.u32 1, %s1220_s30  }
  0x12   : > { %1565 = sst [smem:[#allocation21_spill]] %s1304_s12  ;;  %s304_s14 = sand.u32 1, %s1216_s29  }
  0x13   : > { %s1311_s15 = sshll.u32 %s304_s14, 4  ;;  %s916_s16 = sshll.u32 %s1220_s30, 5 }
  0x14   : > { %s1566_s4 = sld [smem:[#allocation24_spill]]  ;;  %s306_s21 = scalar_lea.vmem [#allocation7], %s1311_s15 }
  0x15   : > { %s314_s22 = sshll.u32 %s306_s21, 4  ;;  %p1320_p6 = pnand %p956_p4, %p139_p5  ;;  %s315_s22 = int_to_ptr.vmem [resolvable:$true] %s314_s22 }
  0x16   : > { %s1327_s26 = scalar_lea.hbm %s1546_s5, %s916_s16  ;;  %s1329_s10 = scalar_lea.sflag [#allocation8], %s302_s13 }
  0x17   : > { %p1004_p8 = pneg %p1320_p6 }
  0x1a   : > { %s311_s19 = scalar_lea.hbm %s1566_s4, %s916_s16 }
  0x1b   : > { %s312_s20 = sshll.u32 %s311_s19, 4  ;;  %s1007_s19 = scalar_lea.hbm %s1566_s4, 64  ;;  %s313_s20 = int_to_ptr.hbm [resolvable:$true] %s312_s20 }
  0x1c   : > { %s1000_s11 = sshra.s32 %s313_s20, 4  ;;  %s1001_s11 = int_to_ptr.hbm [resolvable:$true] %s1000_s11 }
  0x1d   : > { %s1002_s14 = scalar_lea.hbm %s1001_s11, 16  ;;  %p1008_p11 = scmp.lt.s32.totalorder %s1001_s11, %s1566_s4 }
  0x1e   : > { %p1003_p7 = scmp.ne.s32.totalorder %s1001_s11, %s1002_s14  ;;  %p1009_p12 = scmp.lt.s32.totalorder %s1007_s19, %s1002_s14 }
  0x20   : > { %p1005_p9 = pnand %p1004_p8, %p1003_p7  ;;  %p1010_p13 = por %p1009_p12, %p1008_p11 }
  0x22   : > { %p1006_p10 = pneg %p1005_p9 }
  0x24   : > { %p1011_p1 = pnand %p1010_p13, %p1006_p10 }
  0x26   : > { %1014 = shalt.err (!%p1011_p1)
}
  0x27   : > { %s1551_s13 = smov 128   ;;  %s1552_s16 = smov 8  }
  0x28   : > { %941 = dma.hbm_to_vmem [thread:$0]  (!%p1320_p6), %s313_s20, 256, %s315_s22, %s1329_s10, %s1551_s13, %s1551_s13, %s1552_s16  }
  0x29   : > { %s334_s25 = sshll.u32 %s1327_s26, 4  ;;  %s328_s11 = scalar_lea.vmem [#allocation9], %s1311_s15  ;;  %s335_s25 = int_to_ptr.hbm [resolvable:$true] %s334_s25 }
  0x2a   : > { %s1350_s14 = sshll.u32 %s328_s11, 4  ;;  %s1353_s17 = sadd.s32 4294967295, %s1220_s30   ;;  %s337_s14 = int_to_ptr.vmem [resolvable:$true] %s1350_s14 }
  0x2b   : > { %s1550_s18 = sadd.s32 4294967294, %s1220_s30   ;;  %p143_p2 = scmp.ne.s32.totalorder %s1212_s28, %s1208_s27 }
  0x2c   : > { %p1553_p4 = scmp.eq.s32.totalorder %s1353_s17, 0  ;;  %p193_p5 = scmp.eq.s32.totalorder %s1353_s17, 1 }
  0x2d   : > { %p199_p7 = scmp.eq.s32.totalorder %s1550_s18, 1  ;;  %p887_p10 = scmp.ge.s32.totalorder %s1220_s30, 1 }
  0x2e   : > { %p1364_p9 = por %p1553_p4, %p143_p2  ;;  %p1372_p11 = por %p193_p5, %p137_p0 }
  0x2f   : > { %p1376_p12 = por %p199_p7, %p143_p2  ;;  %p258_p13 = scmp.lt.s32.totalorder %s1220_s30, 3 }
  0x30   : > { %s1572_s1 = sld [smem:[#allocation23_spill]]  ;;  %s1224_s11 = smov [#allocation4]  }
  0x31   : > { %s1570_s22 = scalar_select %p1376_p12, 1, 0 }
  0x32   : > { %p1384_p1 = pnand %p887_p10, %p258_p13  ;;  %s271_s18 = sshll.u32 %s1224_s11, 4  ;;  %s272_s18 = int_to_ptr.vmem [resolvable:$true] %s271_s18 }
  0x33   : > { %1571 = sst [smem:[#allocation22_spill]] %s1570_s22  ;;  %s1030_s26 = sshra.s32 %s335_s25, 4  ;;  %s1031_s26 = int_to_ptr.hbm [resolvable:$true] %s1030_s26 }
  0x34   : > { %p934_p0 = pneg %p1384_p1  ;;  %s1032_s19 = scalar_lea.hbm %s1031_s26, 16 }
  0x35   : > { %p1033_p5 = scmp.ne.s32.totalorder %s1031_s26, %s1032_s19  ;;  %s1037_s11 = scalar_lea.hbm %s1546_s5, 64 }
  0x36   : > { %s269_s21 = sshll.u32 %s1572_s1, 4  ;;  %p1393_p2 = pnand %p934_p0, %p1553_p4  ;;  %s270_s21 = int_to_ptr.hbm [resolvable:$true] %s269_s21 }
  0x37   : > { %p1035_p7 = pnand %p1033_p5, %p1004_p8  ;;  %p1038_p13 = scmp.lt.s32.totalorder %s1031_s26, %s1546_s5 }
  0x38   : > { %p1039_p0 = scmp.lt.s32.totalorder %s1037_s11, %s1032_s19 }
  0x39   : > { %p1036_p10 = pneg %p1035_p7 }
  0x3a   : > { %p1040_p3 = por %p1039_p0, %p1038_p13 }
  0x3c   : > { %p1041_p4 = pnand %p1040_p3, %p1036_p10 }
  0x3e   : > { %1044 = shalt.err (!%p1041_p4)
}
  0x3f   : > { %s1575_s29 = smov 8   ;;  %s1576_s9 = smov 128  }
  0x40   : > { %944 = dma.hbm_to_vmem [thread:$0]  (!%p1320_p6), %s335_s25, 256, %s337_s14, %s1329_s10, %s1576_s9, %s1576_s9, %s1575_s29  }
  0x41   : > { %s1225_s30 = smov 384   ;;  %s1226_s22 = smov 24  }
  0x42   : > { %937 = dma.hbm_to_vmem [thread:$0]  (!%p1393_p2), %s270_s21, 6144, %s272_s18, [#allocation5], %s1225_s30, %s1225_s30, %s1226_s22  }
  0x43   : > { %348 = sbr.rel (%p1384_p1) target bundleno = 645 (0x285), region = 44  ;;  %p1577_p8 = scmp.eq.s32.totalorder (!%p1384_p1), %s1353_s17, 0 }
  0x48   : > { %1191 = dma.done.wait (%p1577_p8), [#allocation5], 6144   ;;  %p1578_p3 = pmov %p1577_p8 }
  0x49   : > { %s355_s1 = sand.u32 1, %s1353_s17   ;;  %s1422_s4 = sand.u32 1, %s1212_s28  }
  0x4a   : > { %1193 = vsyncadd (%p1578_p3), [#allocation5], 4294961152  ;;  %s898_s29 = sshll.u32 %s1422_s4, 4  ;;  %s356_s30 = scalar_lea.sflag [#allocation8], %s355_s1 }
  0x4b   : > { %s1429_s9 = scalar_lea.vmem [#allocation7], %s898_s29 }
  0x4c   : > { %1195 = dma.done.wait (%p1364_p9), %s356_s30, 512  }
  0x4d   : > { %1197 = vsyncadd (%p1364_p9), %s356_s30, 4294966784  ;;  %v481_v0 = vld [vmem:[#allocation4 + $0x170] sm:$0xff]  ;;  %v478_v1 = vld [vmem:[#allocation4 + $0x158] sm:$0xff]  ;;  %p426_p6 = scmp.lt.s32.totalorder %s1353_s17, 1  ;;  %s1449_s18 = sshll.u32 %s1422_s4, 3  ;;  %vm583_vm0 = vcmask 130048  }
  0x4e   : > { %511 = vmatpush.msra.mxu1 %v481_v0  ;;  %v480_v2 = vld [vmem:[#allocation4 + $0x168] sm:$0xff]  ;;  %v477_v3 = vld [vmem:[#allocation4 + $0x150] sm:$0xff]  ;;  %v475_v4 = vld [vmem:[#allocation4 + $0x140] sm:$0xff]  ;;  %s418_s20 = scalar_lea.vmem [#allocation11], %s1449_s18  ;;  %s369_s26 = scalar_lea.vmem [#allocation9], %s898_s29 }
  0x4f   : > { %491 = vmatpush.msra.mxu0 %v480_v2  ;;  %v474_v5 = vld [vmem:[#allocation4 + $0x138] sm:$0xff]  ;;  %v472_v6 = vld [vmem:[#allocation4 + $0x128] sm:$0xff]  ;;  %v471_v7 = vld [vmem:[#allocation4 + $0x120] sm:$0xff]  ;;  %s1437_s12 = scalar_select %p426_p6, %s1353_s17, 1 }
  0x50   : > { %512 = vmatpush.msra.mxu1 %v478_v1  ;;  %v469_v8 = vld [vmem:[#allocation4 + $0x110] sm:$0xff]  ;;  %v468_v9 = vld [vmem:[#allocation4 + $0x108] sm:$0xff]  ;;  %v466_v10 = vld [vmem:[#allocation4 + $0xf8] sm:$0xff]  ;;  %s425_s19 = scalar_lea.vmem [#allocation13], %s1449_s18  ;;  %s918_s11 = sshll.u32 %s1353_s17, 5 }
  0x51   : > { %492 = vmatpush.msra.mxu0 %v477_v3  ;;  %v465_v11 = vld [vmem:[#allocation4 + $0xf0] sm:$0xff]  ;;  %v463_v12 = vld [vmem:[#allocation4 + $0xe0] sm:$0xff]  ;;  %v462_v13 = vld [vmem:[#allocation4 + $0xd8] sm:$0xff]  ;;  %s903_s23 = sshll.u32 %s1437_s12, 3  ;;  %s803_s25 = scalar_lea.hbm %s1549_s8, %s918_s11 }
  0x52   : > { %513 = vmatpush.msra.mxu1 %v475_v4  ;;  %v460_v14 = vld [vmem:[#allocation4 + $0xc8] sm:$0xff]  ;;  %v459_v15 = vld [vmem:[#allocation4 + $0xc0] sm:$0xff]  ;;  %v457_v16 = vld [vmem:[#allocation4 + $0xb0] sm:$0xff]  ;;  %s429_s16 = scalar_lea.vmem %s1541_s0, %s903_s23  ;;  %s433_s24 = scalar_lea.vmem %s1544_s3, %s903_s23 }
  0x53   : > { %493 = vmatpush.msra.mxu0 %v474_v5  ;;  %v456_v17 = vld [vmem:[#allocation4 + $0xa8] sm:$0xff]  ;;  %v454_v18 = vld [vmem:[#allocation4 + $0x98] sm:$0xff]  ;;  %v453_v19 = vld [vmem:[#allocation4 + $0x90] sm:$0xff]  ;;  %s674_s23 = sshll.u32 %s418_s20, 4  ;;  %s1479_s14 = scalar_lea.sflag [#allocation12], %s355_s1  ;;  %s675_s23 = int_to_ptr.vmem [resolvable:$true] %s674_s23 }
  0x54   : > { %514 = vmatpush.msra.mxu1 %v472_v6  ;;  %v451_v20 = vld [vmem:[#allocation4 + $0x80] sm:$0xff]  ;;  %v450_v21 = vld [vmem:[#allocation4 + $0x78] sm:$0xff]  ;;  %v448_v22 = vld [vmem:[#allocation4 + $0x68] sm:$0xff] }
  0x55   : > { %494 = vmatpush.msra.mxu0 %v471_v7  ;;  %v447_v23 = vld [vmem:[#allocation4 + $0x60] sm:$0xff]  ;;  %v445_v24 = vld [vmem:[#allocation4 + $0x50] sm:$0xff]  ;;  %v444_v25 = vld [vmem:[#allocation4 + $0x48] sm:$0xff] }
  0x56   : > { %515 = vmatpush.msra.mxu1 %v469_v8  ;;  %v442_v26 = vld [vmem:[#allocation4 + $0x38] sm:$0xff]  ;;  %v441_v27 = vld [vmem:[#allocation4 + $0x30] sm:$0xff]  ;;  %v439_v28 = vld [vmem:[#allocation4 + $0x20] sm:$0xff] }
  0x57   : > { %495 = vmatpush.msra.mxu0 %v468_v9  ;;  %v438_v29 = vld [vmem:[#allocation4 + $0x18] sm:$0xff]  ;;  %v436_v30 = vld [vmem:[#allocation4 + $0x8] sm:$0xff]  ;;  %v434_v31 = vld [vmem:[%s429_s16] sm:$0xff] }
  0x58   : > { %516 = vmatpush.msra.mxu1 %v466_v10  ;;  %v435_v32 = vld [vmem:[#allocation4] sm:$0xff]  ;;  %v482_v33 = vld [vmem:[#allocation4 + $0x178] sm:$0xff]  ;;  %v476_v35 = vld [vmem:[#allocation4 + $0x148] sm:$0xff] }
  0x59   : > { %496 = vmatpush.msra.mxu0 %v465_v11  ;;  %v479_v34 = vld [vmem:[#allocation4 + $0x160] sm:$0xff]  ;;  %531 = vmatpush.msra.mxu2 %v482_v33  ;;  %v473_v36 = vld [vmem:[#allocation4 + $0x130] sm:$0xff]  ;;  %v470_v37 = vld [vmem:[#allocation4 + $0x118] sm:$0xff] }
  0x5a   : > { %517 = vmatpush.msra.mxu1 %v463_v12  ;;  %v467_v38 = vld [vmem:[#allocation4 + $0x100] sm:$0xff]  ;;  %v464_v39 = vld [vmem:[#allocation4 + $0xe8] sm:$0xff]  ;;  %v461_v40 = vld [vmem:[#allocation4 + $0xd0] sm:$0xff] }
  0x5b   : > { %497 = vmatpush.msra.mxu0 %v462_v13  ;;  %532 = vmatpush.msra.mxu2 %v479_v34  ;;  %v458_v41 = vld [vmem:[#allocation4 + $0xb8] sm:$0xff]  ;;  %v483_v42 = vld [vmem:[%s1543_s2] sm:$0x7]  ;;  %v452_v44 = vld [vmem:[#allocation4 + $0x88] sm:$0xff] }
  0x5c   : > { %518 = vmatpush.msra.mxu1 %v460_v14  ;;  %v455_v43 = vld [vmem:[#allocation4 + $0xa0] sm:$0xff]  ;;  %v486_v45 = vperm.slane %v483_v42, 1  ;;  %v485_v46 = vperm.slane %v483_v42, 0  ;;  %v449_v47 = vld [vmem:[#allocation4 + $0x70] sm:$0xff]  ;;  %v446_v49 = vld [vmem:[#allocation4 + $0x58] sm:$0xff]  ;;  %v487_v62 = vperm.slane %v483_v42, 2 }
  0x5d   : > { %498 = vmatpush.msra.mxu0 %v459_v15  ;;  %533 = vmatpush.msra.mxu2 %v476_v35  ;;  %v443_v53 = vld [vmem:[#allocation4 + $0x40] sm:$0xff]  ;;  %v440_v55 = vld [vmem:[#allocation4 + $0x28] sm:$0xff]  ;;  %v437_v57 = vld [vmem:[#allocation4 + $0x10] sm:$0xff] }
  0x5e   : > { %519 = vmatpush.msra.mxu1 %v457_v16  ;;  %v554_v54 = vld [vmem:[%s1429_s9] sm:$0xff]  ;;  %s799_s9 = scalar_lea.hbm %s1548_s7, %s918_s11 }
  0x5f   : > { %499 = vmatpush.msra.mxu0 %v456_v17  ;;  %534 = vmatpush.msra.mxu2 %v473_v36  ;;  %v562_v58 = vld [vmem:[%s433_s24] sm:$0xff]  ;;  %s800_s12 = scalar_lea.hbm %s799_s9, 8 }
  0x60   : > { %520 = vmatpush.msra.mxu1 %v454_v18  ;;  %v556_v1 = vld [vmem:[%s369_s26] sm:$0xff]  ;;  %s676_s10 = sshll.u32 %s800_s12, 4  ;;  %s677_s10 = int_to_ptr.hbm [resolvable:$true] %s676_s10 }
  0x61   : > { %500 = vmatpush.msra.mxu0 %v453_v19  ;;  %535 = vmatpush.msra.mxu2 %v470_v37  ;;  %s1104_s22 = sshra.s32 %s677_s10, 4  ;;  %s1105_s22 = int_to_ptr.hbm [resolvable:$true] %s1104_s22 }
  0x62   : > { %521 = vmatpush.msra.mxu1 %v451_v20  ;;  %s1106_s21 = scalar_lea.hbm %s1105_s22, 8  ;;  %p1111_p2 = scmp.lt.s32.totalorder %s1105_s22, %s1548_s7 }
  0x63   : > { %501 = vmatpush.msra.mxu0 %v450_v21  ;;  %536 = vmatpush.msra.mxu2 %v467_v38  ;;  %p1107_p4 = scmp.ne.s32.totalorder %s1105_s22, %s1106_s21 }
  0x64   : > { %522 = vmatpush.msra.mxu1 %v448_v22 }
  0x65   : > { %502 = vmatpush.msra.mxu0 %v447_v23  ;;  %537 = vmatpush.msra.mxu2 %v464_v39  ;;  %p1108_p9 = pnand %p1107_p4, %p1372_p11 }
  0x66   : > { %523 = vmatpush.msra.mxu1 %v445_v24 }
  0x67   : > { %503 = vmatpush.msra.mxu0 %v444_v25  ;;  %538 = vmatpush.msra.mxu2 %v461_v40  ;;  %p1109_p1 = pneg %p1108_p9 }
  0x68   : > { %524 = vmatpush.msra.mxu1 %v442_v26 }
  0x69   : > { %504 = vmatpush.msra.mxu0 %v441_v27  ;;  %539 = vmatpush.msra.mxu2 %v458_v41 }
  0x6a   : > { %525 = vmatpush.msra.mxu1 %v439_v28 }
  0x6b   : > { %505 = vmatpush.msra.mxu0 %v438_v29  ;;  %540 = vmatpush.msra.mxu2 %v455_v43 }
  0x6c   : > { %526 = vmatpush.msra.mxu1 %v436_v30 }
  0x6d   : > { %527 = vmatmul.f32.vlgmr.msra.gmra.mxu1 %v434_v31  ;;  %506 = vmatpush.msra.mxu0 %v435_v32 }
  0x6e   : > { %507 = vmatmul.f32.vlgmr.msra.gmra.mxu0 %v434_v31  ;;  %541 = vmatpush.msra.mxu2 %v452_v44 }
  0x70   : > { %542 = vmatpush.msra.mxu2 %v449_v47 }
  0x72   : > { %543 = vmatpush.msra.mxu2 %v446_v49 }
  0x74   : > { %544 = vmatpush.msra.mxu2 %v443_v53 }
  0x76   : > { %545 = vmatpush.msra.mxu2 %v440_v55 }
  0x78   : > { %546 = vmatpush.msra.mxu2 %v437_v57 }
  0x79   : > { %547 = vmatmul.f32.vlgmr.msra.gmra.mxu2 %v434_v31 }
  0xea   : > { %v528_v48 = vpop.f32.mrf.mxu1 }
  0xeb   : > { %v529_v50 = vadd.f32 %v528_v48, %v486_v45  ;;  %v508_v51 = vpop.f32.mrf.mxu0 }
  0xec   : > { %v509_v52 = vadd.f32 %v508_v51, %v485_v46 }
  0xed   : > { %552 = vst [vmem:[%s418_s20] sm:$0xff] %v529_v50  ;;  %577 = vmatpush.xpose.msra.mxu3 %v529_v50  ;;  %s1110_s20 = scalar_lea.hbm %s1548_s7, 64 }
  0xee   : > { %v551_v56 = vmul.f32 0.088388346, %v509_v52  ;;  %p1112_p5 = scmp.lt.s32.totalorder %s1110_s20, %s1106_s21 }
  0xf0   : > { %p1113_p7 = por %p1112_p5, %p1111_p2 }
  0xf1   : > { %578 = vmatpush.xpose.msra.mxu3 %v554_v54 }
  0xf2   : > { %p1114_p10 = pnand %p1113_p7, %p1109_p1 }
  0xf4   : > { %579 = vmatmul.f32.vlgmr.msra.gmra.mxu3 %v551_v56 }
  0xfc   : > { %v548_v63 = vpop.f32.mrf.mxu2 }
  0xfd   : > { %v549_v0 = vadd.f32 %v548_v63, %v487_v62 }
  0xff   : > { %553 = vst [vmem:[%s425_s19] sm:$0xff] %v549_v0  ;;  %627 = vmatpush.msrb.mxu3 %v549_v0 }
 0x101   : > { %628 = vmatpush.msrb.mxu3 %v556_v1 }
 0x177   : > { %v580_v59 = vpop.f32.mrf.mxu3 }
 0x178   : > { %v581_v60 = vadd.f32 %v580_v59, %v562_v58 }
 0x17a   : > { %v584_v61 = vsel %vm583_vm0, %v581_v60, -inf }
 0x17b   : > { %585 = vmax.xlane.f32.xlu0 %v584_v61 }
 0x1ee   : > { %v586_v2 = vpop.xlane.xlu0 %585 }
 0x1ef   : > { %v587_v3 = vsub.f32 %v581_v60, %v586_v2 }
 0x1f1   : > { %v588_v4 = vmul.f32 1.442695, %v587_v3 }
 0x1f3   : > { %996 = vpow2.f32 %v588_v4 }
 0x1f9   : > { %v997_v5 = vpop.eup %996 }
 0x1fa   : > { %905 = vmatmul.msk.f32.vlgmr.msrb.gmra.mxu3 %vm583_vm0, %v997_v5  ;;  %v590_v6 = vsel %vm583_vm0, %v997_v5, 0.0 }
 0x1fb   : > { %591 = vadd.xlane.f32.xlu0 %v590_v6 }
 0x1fc   : > { %1117 = shalt.err (!%p1114_p10)
}
 0x1fd   : > { %929 = dma.vmem_to_hbm [thread:$0]  (%p1372_p11), %s675_s23, 128, %s677_s10, %s1479_s14  }
 0x1fe   : > { %s690_s1 = sshll.u32 %s425_s19, 4  ;;  %s804_s11 = scalar_lea.hbm %s803_s25, 8  ;;  %s691_s1 = int_to_ptr.vmem [resolvable:$true] %s690_s1 }
 0x1ff   : > { %s692_s9 = sshll.u32 %s804_s11, 4  ;;  %s1138_s21 = scalar_lea.hbm %s1549_s8, 64  ;;  %s693_s9 = int_to_ptr.hbm [resolvable:$true] %s692_s9 }
 0x200   : > { %s1132_s12 = sshra.s32 %s693_s9, 4  ;;  %s1133_s12 = int_to_ptr.hbm [resolvable:$true] %s1132_s12 }
 0x201   : > { %s1134_s13 = scalar_lea.hbm %s1133_s12, 8  ;;  %p1139_p3 = scmp.lt.s32.totalorder %s1133_s12, %s1549_s8 }
 0x202   : > { %p1135_p13 = scmp.ne.s32.totalorder %s1133_s12, %s1134_s13  ;;  %p1140_p6 = scmp.lt.s32.totalorder %s1138_s21, %s1134_s13 }
 0x204   : > { %p1136_p0 = pnand %p1135_p13, %p1372_p11  ;;  %p1141_p4 = por %p1140_p6, %p1139_p3 }
 0x206   : > { %p1137_p8 = pneg %p1136_p0 }
 0x208   : > { %p1142_p9 = pnand %p1141_p4, %p1137_p8 }
 0x20a   : > { %1145 = shalt.err (!%p1142_p9)
}
 0x20b   : > { %930 = dma.vmem_to_hbm [thread:$0]  (%p1372_p11), %s691_s1, 128, %s693_s9, %s1479_s14  }
 0x20c   : > { %s909_s19 = sshll.u32 %s1353_s17, 3  ;;  %s411_s14 = scalar_lea.vmem [#allocation10], %s1449_s18 }
 0x20d   : > { %s656_s25 = scalar_lea.hbm %s1547_s6, %s909_s19  ;;  %s658_s20 = sshll.u32 %s411_s14, 4  ;;  %s659_s20 = int_to_ptr.vmem [resolvable:$true] %s658_s20 }
 0x20e   : > { %s660_s29 = sshll.u32 %s656_s25, 4  ;;  %s636_s17 = scalar_lea.sflag [#allocation6], %s1422_s4  ;;  %s661_s29 = int_to_ptr.hbm [resolvable:$true] %s660_s29 }
 0x20f   : > { %s1160_s30 = sshra.s32 %s661_s29, 4  ;;  %s1166_s9 = scalar_lea.hbm %s1547_s6, 16  ;;  %s1161_s30 = int_to_ptr.hbm [resolvable:$true] %s1160_s30 }
 0x210   : > { %s1162_s1 = scalar_lea.hbm %s1161_s30, 8  ;;  %p1167_p7 = scmp.lt.s32.totalorder %s1161_s30, %s1547_s6 }
 0x211   : > { %p1163_p1 = scmp.ne.s32.totalorder %s1161_s30, %s1162_s1  ;;  %p1168_p10 = scmp.lt.s32.totalorder %s1166_s9, %s1162_s1 }
 0x213   : > { %p1164_p2 = pnand %p1163_p1, %p1372_p11  ;;  %p1169_p13 = por %p1168_p10, %p1167_p7 }
 0x215   : > { %p1165_p5 = pneg %p1164_p2 }
 0x217   : > { %p1170_p0 = pnand %p1169_p13, %p1165_p5 }
 0x26e   : > { %v592_v7 = vpop.xlane.xlu0 %591 }
 0x26f   : > { %998 = vrcp.f32 %v592_v7  ;;  %v604_v11 = vand.u32 2147483648, %v592_v7  ;;  %v602_v13 = vand.u32 2147483647, %v592_v7  ;;  %vm598_vm2 = vweird.f32 %v592_v7 }
 0x271   : > { %v605_v15 = vor.u32 1.1754944e-38, %v604_v11  ;;  %vm603_vm4 = vcmp.eq.f32.partialorder %v602_v13, 8.507059e+37 }
 0x275   : > { %v999_v8 = vpop.eup %998 }
 0x276   : > { %v594_v9 = vmul.f32 %v999_v8, %v592_v7  ;;  %vm599_vm1 = vweird.f32 %v999_v8 }
 0x277   : > { %vm600_vm3 = vmor %vm598_vm2, %vm599_vm1 }
 0x278   : > { %v595_v10 = vsub.f32 1.0, %v594_v9 }
 0x27a   : > { %v596_v12 = vmul.f32 %v999_v8, %v595_v10 }
 0x27c   : > { %v597_v14 = vadd.f32 %v999_v8, %v596_v12 }
 0x27d   : > { %v630_v18 = vpop.f32.mrf.mxu3 }
 0x27e   : > { %v601_v16 = vsel %vm600_vm3, %v999_v8, %v597_v14 }
 0x27f   : > { %v606_v17 = vsel %vm603_vm4, %v605_v15, %v601_v16 }
 0x280   : > { %v633_v19 = vmul.f32 %v630_v18, %v606_v17 }
 0x282   : > { %634 = vst [vmem:[%s411_s14] sm:$0xff] %v633_v19 }
 0x283   : > { %1173 = shalt.err (!%p1170_p0)
}
 0x284   : > { %928 = dma.vmem_to_hbm [thread:$0]  (%p1372_p11), %s659_s20, 128, %s661_s29, %s636_s17  }
 0x285 PF: > { %s1580_s16 = sld [smem:[#allocation19_spill]]  ;;  %s704_s22 = sand.u32 1, %s1208_s27  }
 0x286   : > { %s705_s21 = scalar_lea.sflag [#allocation6], %s704_s22 }
 0x28b   : > { %p1581_p8 = scmp.ge.s32.totalorder %s1580_s16, 2 }
 0x28d   : > { %p946_p3 = pnand %p1581_p8, %p1376_p12 }
 0x28f   : > { %p947_p6 = pneg %p946_p3 }
 0x291   : > { %1199 = dma.done.wait (%p947_p6), %s705_s21, 128  }
 0x292   : > { %1201 = vsyncadd (%p947_p6), %s705_s21, 4294967168  ;;  %s1582_s24 = sadd.s32 4294967294, %s1580_s16  }
 0x293   : > { %s714_s26 = sand.u32 1, %s1582_s24  }
 0x294   : > { %s715_s19 = scalar_lea.sflag [#allocation12], %s714_s26 }
 0x295   : > { %1203 = dma.done.wait (%p947_p6), %s715_s19, 256  }
 0x296   : > { %1205 = vsyncadd (%p947_p6), %s715_s19, 4294967040  ;;  %s1583_s30 = sld [smem:[#allocation20_spill]]  ;;  %s1586_s27 = smov %s1212_s28 }
 0x297   : > { %s1584_s15 = sld [smem:[#allocation18_spill]] }
 0x298   : > { %s1585_s29 = sld [smem:[#allocation21_spill]] }
 0x29c   : > { %p26_p11 = scmp.ge.s32.totalorder %s1583_s30, 4  }
 0x29d   : > { %s1587_s28 = smov %s1584_s15 }
 0x29e   :  { %28 = sbr.rel (!%p26_p11) target bundleno = 11 (0xb), region = 143 }
 0x2a3   :  { %731 = vsyncpa [#allocation5], 1 }
 0x2a4   :  { %733 = vsyncpa [#allocation5 + $0x1], 1 }
 0x2a5   :  { %734 = vsyncpa [#allocation8], 1 }
 0x2a6   :  { %736 = vsyncpa [#allocation8 + $0x1], 1 }
 0x2a7   :  { %737 = vsyncpa [#allocation6], 1 }
 0x2a8   :  { %739 = vsyncpa [#allocation6 + $0x1], 1 }
 0x2a9   :  { %740 = vsyncpa [#allocation12], 1 }
 0x2aa   :  { %742 = vsyncpa [#allocation12 + $0x1], 1 }

</bundles_post_ra>
